<compile_context>
chip_gen: v7x
topology: tpu7x:2x2x1
jax: 0.10.0
libtpu: 0.0.40
codegen_flags: <defaults>
</compile_context>

<pallas_src>
import functools

import jax
import jax.numpy as jnp
from jax.experimental import pallas as pl
from jax.experimental.pallas import tpu as pltpu


# ---------------------------------------------------------------------------
# Pallas 3x3 same-padding conv kernel, NCHW with lane-dense flattened spatial
# ---------------------------------------------------------------------------
def _conv3x3_kernel(x_ref, w_ref, b_ref, o_ref, xpad_ref, patches_ref,
                    *, H, W, Cin, Cout):
    # x_ref       : (1, Cin, H*W)        input, spatial flattened on lanes
    # w_ref       : (Cout, 9*Cin)        weights, tap-major ((kh*3+kw)*Cin+ci)
    # b_ref       : (Cout, 1)            bias
    # o_ref       : (1, Cout, H*W)       output (already NCHW when reshaped)
    # xpad_ref    : (Cin, H*W + 2*PAD)   VMEM scratch: lane-padded input
    # patches_ref : (9*Cin, H*W)         VMEM scratch: im2col patch matrix
    HW = H * W
    PAD = W + 1                          # covers every flattened shift |dh*W+dw|

    # Build the zero halo in VMEM (replaces the wrapper-side jnp.pad, which
    # cost an extra HBM write+read of the whole activation).
    zeros_halo = jnp.zeros((Cin, PAD), xpad_ref.dtype)
    xpad_ref[:, :PAD] = zeros_halo
    xpad_ref[:, PAD + HW:] = zeros_halo
    xpad_ref[:, PAD:PAD + HW] = x_ref[0]             # (Cin, HW)

    # Column index of each flattened spatial position (2-D iota for TPU).
    col = jax.lax.broadcasted_iota(jnp.int32, (1, HW), 1) % W

    # im2col: 9 shifted taps -> (9*Cin, HW).  Each tap is a pure lane-shifted
    # load of the padded buffer (no H x W -> H*W relayout reshapes); only the
    # cross-row wrap for dw != 0 needs masking, the halo handles dh = +/-1.
    for kh in range(3):
        for kw in range(3):
            dh, dw = kh - 1, kw - 1
            start = PAD + dh * W + dw
            tap = xpad_ref[:, start:start + HW]      # (Cin, HW)
            if dw == 1:
                tap = jnp.where(col < (W - 1), tap, 0.0)
            elif dw == -1:
                tap = jnp.where(col >= 1, tap, 0.0)
            t = kh * 3 + kw
            patches_ref[t * Cin:(t + 1) * Cin, :] = tap

    # One fused MXU matmul over K = 9*Cin (instead of nine K=Cin matmuls):
    # (Cout, 9*Cin) @ (9*Cin, HW) -> (Cout, HW), f32 accumulation.
    acc = jnp.dot(w_ref[...], patches_ref[...],
                  preferred_element_type=jnp.float32)
    acc = acc + b_ref[...]                           # (Cout, 1) broadcast
    # Output is (Cout, HW): Cout on sublanes, HW lane-dense -> unmasked full
    # width stores (no vst.msk partial stores).
    o_ref[...] = acc.reshape(1, Cout, HW).astype(o_ref.dtype)


def conv3x3_same_nchw(x, weight_oihw, bias):
    """3x3 'same' conv.  x: (B, Cin, H, W); weight: (Cout, Cin, 3, 3); bias: (Cout,)."""
    B, Cin, H, W = x.shape
    Cout = weight_oihw.shape[0]
    HW = H * W
    PAD = W + 1

    x_flat = x.reshape(B, Cin, HW)                   # contiguous, no transpose
    # Tap-major packed weights matching the kernel's patch order.
    w_packed = jnp.transpose(weight_oihw, (0, 2, 3, 1)).reshape(Cout, 9 * Cin)
    b2 = bias.reshape(Cout, 1)

    kernel = functools.partial(_conv3x3_kernel, H=H, W=W, Cin=Cin, Cout=Cout)

    # TODO(synk): for production resolutions add H-tiling with a 1-row halo and
    # an explicit vmem_limit_bytes (v7x has 64 MiB VMEM); at demo scale a whole
    # image per grid step is well under the default scoped limit.
    out = pl.pallas_call(
        kernel,
        out_shape=jax.ShapeDtypeStruct((B, Cout, HW), x.dtype),
        grid_spec=pltpu.PrefetchScalarGridSpec(
            num_scalar_prefetch=0,
            grid=(B,),
            in_specs=[
                pl.BlockSpec((1, Cin, HW), lambda b: (b, 0, 0)),
                pl.BlockSpec((Cout, 9 * Cin), lambda b: (0, 0)),
                pl.BlockSpec((Cout, 1), lambda b: (0, 0)),
            ],
            out_specs=pl.BlockSpec((1, Cout, HW), lambda b: (b, 0, 0)),
            scratch_shapes=[
                pltpu.VMEM((Cin, HW + 2 * PAD), x.dtype),   # padded input
                pltpu.VMEM((9 * Cin, HW), x.dtype),         # im2col patches
            ],
        ),
        compiler_params=pltpu.CompilerParams(
            # batch elements are independent -> shard across TCs (v7x megacore)
            dimension_semantics=("parallel",),
        ),
    )(x_flat, w_packed, b2)
    return out.reshape(B, Cout, H, W)


# ---------------------------------------------------------------------------
# Representative inner model (what module.inference(model, ...) would run)
# ---------------------------------------------------------------------------
class PallasFramePredictor:
    """Predicts the next frame from `past_frames` stacked input frames."""

    def __init__(self, channels, past_frames, key):
        self.channels = channels
        self.past_frames = past_frames
        cin = channels * past_frames
        k_w, k_b = jax.random.split(key)
        # deterministic in-script init (fan-in scaled normal), PyTorch OIHW layout
        self.weight = (
            jax.random.normal(k_w, (channels, cin, 3, 3), jnp.float32)
            * (1.0 / (3 * 3 * cin)) ** 0.5
        )
        self.bias = jax.random.normal(k_b, (channels,), jnp.float32) * 0.01

    def inference(self, iter_samples, calc_loss=False, return_velocity=False):
        # iter_samples: (B, T, C, H, W) NCHW frames, T >= past_frames (+1 if calc_loss)
        B, T, C, H, W = iter_samples.shape
        past = iter_samples[:, : self.past_frames]            # (B, P, C, H, W)
        # Stack past frames along channels; stays NCHW (no transposes needed).
        x = past.reshape(B, self.past_frames * C, H, W)       # (B, P*C, H, W)

        pred = conv3x3_same_nchw(x, self.weight, self.bias)   # (B, C, H, W)

        outputs = [pred]
        if calc_loss:
            target = iter_samples[:, self.past_frames]        # (B, C, H, W)
            outputs.append(jnp.mean((pred - target) ** 2))
        if return_velocity:
            last = iter_samples[:, self.past_frames - 1]      # (B, C, H, W)
            outputs.append(pred - last)
        return outputs[0] if len(outputs) == 1 else tuple(outputs)


class Model:
    """JAX analogue of the PyTorch dispatcher wrapper."""

    def __init__(self, channels=4, past_frames=3, seed=42):
        self.model = PallasFramePredictor(
            channels, past_frames, jax.random.PRNGKey(seed)
        )

    def forward(self, iter_samples, calc_loss=False, return_velocity=False):
        return self.model.inference(iter_samples, calc_loss, return_velocity)


# ---------------------------------------------------------------------------
if __name__ == "__main__":
    B, T, C, H, W = 2, 4, 4, 16, 16  # T = past_frames(3) + 1 ground-truth frame
    key = jax.random.PRNGKey(0)
    iter_samples = jax.random.normal(key, (B, T, C, H, W), jnp.float32)

    model = Model(channels=C, past_frames=3, seed=42)

    pred, loss, vel = model.forward(
        iter_samples, calc_loss=True, return_velocity=True
    )
    jax.block_until_ready((pred, loss, vel))

    assert pred.shape == (B, C, H, W)
    assert vel.shape == (B, C, H, W)
    assert loss.shape == ()

    # Correctness check of the Pallas conv against XLA's conv (cross-correlation,
    # same semantics as torch.nn.Conv2d with padding=1).
    past = iter_samples[:, :3].reshape(B, 3 * C, H, W)
    ref = jax.lax.conv_general_dilated(
        past, model.model.weight, window_strides=(1, 1), padding="SAME",
        dimension_numbers=("NCHW", "OIHW", "NCHW"),
    ) + model.model.bias[None, :, None, None]
    max_err = float(jnp.max(jnp.abs(pred - ref)))
    if not bool(jnp.allclose(pred, ref, atol=1e-2, rtol=1e-2)):
        raise AssertionError(f"Pallas conv mismatch, max abs err = {max_err}")

    print("KERNEL_OK")
</pallas_src>

<mosaic_0001>
module attributes {stable_mosaic.version = 11 : i64} {
  func.func @_conv3x3_kernel(%arg0: i32, %arg1: memref<1x12x256xf32, #tpu.memory_space<vmem>>, %arg2: memref<4x108xf32, #tpu.memory_space<vmem>>, %arg3: memref<4x1xf32, #tpu.memory_space<vmem>>, %arg4: memref<1x4x256xf32, #tpu.memory_space<vmem>>, %arg5: memref<12x290xf32, #tpu.memory_space<vmem>>, %arg6: memref<108x256xf32, #tpu.memory_space<vmem>>) attributes {dimension_semantics = [#tpu.dimension_semantics<parallel>], iteration_bounds = array<i64: 2>, scalar_prefetch = 0 : i64, scratch_operands = 2 : i64, tpu.core_type = #tpu.core_type<tc>, window_params = [{transform_indices = @transform_0, window_bounds = array<i64: 1, 12, 256>}, {pipeline_mode = #tpu.pipeline_mode<synchronous>, transform_indices = @transform_1, window_bounds = array<i64: 4, 108>}, {pipeline_mode = #tpu.pipeline_mode<synchronous>, transform_indices = @transform_2, window_bounds = array<i64: 4, 1>}, {transform_indices = @transform_3, window_bounds = array<i64: 1, 4, 256>}]} {
    %cst = arith.constant 0.000000e+00 : f32
    %0 = vector.broadcast %cst : f32 to vector<12x17xf32>
    %c0 = arith.constant 0 : index
    %c0_0 = arith.constant 0 : index
    %1 = vector.load %arg5[%c0, %c0_0] : memref<12x290xf32, #tpu.memory_space<vmem>>, vector<12x17xf32>
    tpu.vector_store %arg5[%c0, %c0_0], %0 {strides = array<i32>} : memref<12x290xf32, #tpu.memory_space<vmem>>, vector<12x17xf32>,
    %c0_1 = arith.constant 0 : index
    %c273 = arith.constant 273 : index
    %2 = vector.load %arg5[%c0_1, %c273] : memref<12x290xf32, #tpu.memory_space<vmem>>, vector<12x17xf32>
    tpu.vector_store %arg5[%c0_1, %c273], %0 {strides = array<i32>} : memref<12x290xf32, #tpu.memory_space<vmem>>, vector<12x17xf32>,
    %c0_2 = arith.constant 0 : index
    %c0_3 = arith.constant 0 : index
    %c0_4 = arith.constant 0 : index
    %3 = vector.load %arg1[%c0_2, %c0_3, %c0_4] : memref<1x12x256xf32, #tpu.memory_space<vmem>>, vector<1x12x256xf32>
    %4 = vector.shape_cast %3 : vector<1x12x256xf32> to vector<12x256xf32>
    %c0_5 = arith.constant 0 : index
    %c17 = arith.constant 17 : index
    %5 = vector.load %arg5[%c0_5, %c17] : memref<12x290xf32, #tpu.memory_space<vmem>>, vector<12x256xf32>
    tpu.vector_store %arg5[%c0_5, %c17], %4 {strides = array<i32>} : memref<12x290xf32, #tpu.memory_space<vmem>>, vector<12x256xf32>,
    %6 = tpu.iota {dimensions = array<i32: 1>} : vector<1x256xi32>
    %c16_i32 = arith.constant 16 : i32
    %c0_i32 = arith.constant 0 : i32
    %7 = arith.cmpi eq, %c16_i32, %c0_i32 : i32
    %c1_i32 = arith.constant 1 : i32
    %8 = arith.select %7, %c1_i32, %c16_i32 : i32
    %9 = vector.broadcast %8 : i32 to vector<1x256xi32>
    %10 = arith.remsi %6, %9 : vector<1x256xi32>
    %c0_i32_6 = arith.constant 0 : i32
    %11 = vector.broadcast %c0_i32_6 : i32 to vector<1x256xi32>
    %12 = arith.cmpi ne, %10, %11 : vector<1x256xi32>
    %c0_i32_7 = arith.constant 0 : i32
    %13 = vector.broadcast %c0_i32_7 : i32 to vector<1x256xi32>
    %14 = arith.cmpi slt, %10, %13 : vector<1x256xi32>
    %c0_i32_8 = arith.constant 0 : i32
    %15 = arith.cmpi slt, %8, %c0_i32_8 : i32
    %16 = vector.broadcast %15 : i1 to vector<1x256xi1>
    %17 = vector.broadcast %16 : vector<1x256xi1> to vector<1x256xi1>
    %18 = arith.xori %14, %17 : vector<1x256xi1>
    %19 = arith.andi %18, %12 : vector<1x256xi1>
    %20 = vector.broadcast %8 : i32 to vector<1x256xi32>
    %21 = arith.addi %10, %20 : vector<1x256xi32>
    %22 = arith.select %19, %21, %10 : vector<1x256xi1>, vector<1x256xi32>
    %c0_9 = arith.constant 0 : index
    %c0_10 = arith.constant 0 : index
    %23 = vector.load %arg5[%c0_9, %c0_10] : memref<12x290xf32, #tpu.memory_space<vmem>>, vector<12x256xf32>
    %c1_i32_11 = arith.constant 1 : i32
    %24 = vector.broadcast %c1_i32_11 : i32 to vector<1x256xi32>
    %25 = arith.cmpi sge, %22, %24 : vector<1x256xi32>
    %cst_12 = arith.constant 0.000000e+00 : f32
    %26 = vector.shape_cast %25 : vector<1x256xi1> to vector<1x256xi1>
    %27 = vector.broadcast %26 : vector<1x256xi1> to vector<12x256xi1>
    %28 = vector.broadcast %cst_12 : f32 to vector<12x256xf32>
    %29 = arith.select %27, %23, %28 : vector<12x256xi1>, vector<12x256xf32>
    %c0_13 = arith.constant 0 : index
    %c0_14 = arith.constant 0 : index
    %30 = vector.load %arg6[%c0_13, %c0_14] : memref<108x256xf32, #tpu.memory_space<vmem>>, vector<12x256xf32>
    tpu.vector_store %arg6[%c0_13, %c0_14], %29 {strides = array<i32>} : memref<108x256xf32, #tpu.memory_space<vmem>>, vector<12x256xf32>,
    %c0_15 = arith.constant 0 : index
    %c1 = arith.constant 1 : index
    %31 = vector.load %arg5[%c0_15, %c1] : memref<12x290xf32, #tpu.memory_space<vmem>>, vector<12x256xf32>
    %c12 = arith.constant 12 : index
    %c0_16 = arith.constant 0 : index
    %32 = vector.load %arg6[%c12, %c0_16] : memref<108x256xf32, #tpu.memory_space<vmem>>, vector<12x256xf32>
    tpu.vector_store %arg6[%c12, %c0_16], %31 {strides = array<i32>} : memref<108x256xf32, #tpu.memory_space<vmem>>, vector<12x256xf32>,
    %c0_17 = arith.constant 0 : index
    %c2 = arith.constant 2 : index
    %33 = vector.load %arg5[%c0_17, %c2] : memref<12x290xf32, #tpu.memory_space<vmem>>, vector<12x256xf32>
    %c15_i32 = arith.constant 15 : i32
    %34 = vector.broadcast %c15_i32 : i32 to vector<1x256xi32>
    %35 = arith.cmpi slt, %22, %34 : vector<1x256xi32>
    %cst_18 = arith.constant 0.000000e+00 : f32
    %36 = vector.shape_cast %35 : vector<1x256xi1> to vector<1x256xi1>
    %37 = vector.broadcast %36 : vector<1x256xi1> to vector<12x256xi1>
    %38 = vector.broadcast %cst_18 : f32 to vector<12x256xf32>
    %39 = arith.select %37, %33, %38 : vector<12x256xi1>, vector<12x256xf32>
    %c24 = arith.constant 24 : index
    %c0_19 = arith.constant 0 : index
    %40 = vector.load %arg6[%c24, %c0_19] : memref<108x256xf32, #tpu.memory_space<vmem>>, vector<12x256xf32>
    tpu.vector_store %arg6[%c24, %c0_19], %39 {strides = array<i32>} : memref<108x256xf32, #tpu.memory_space<vmem>>, vector<12x256xf32>,
    %c0_20 = arith.constant 0 : index
    %c16 = arith.constant 16 : index
    %41 = vector.load %arg5[%c0_20, %c16] : memref<12x290xf32, #tpu.memory_space<vmem>>, vector<12x256xf32>
    %c1_i32_21 = arith.constant 1 : i32
    %42 = vector.broadcast %c1_i32_21 : i32 to vector<1x256xi32>
    %43 = arith.cmpi sge, %22, %42 : vector<1x256xi32>
    %cst_22 = arith.constant 0.000000e+00 : f32
    %44 = vector.shape_cast %43 : vector<1x256xi1> to vector<1x256xi1>
    %45 = vector.broadcast %44 : vector<1x256xi1> to vector<12x256xi1>
    %46 = vector.broadcast %cst_22 : f32 to vector<12x256xf32>
    %47 = arith.select %45, %41, %46 : vector<12x256xi1>, vector<12x256xf32>
    %c36 = arith.constant 36 : index
    %c0_23 = arith.constant 0 : index
    %48 = vector.load %arg6[%c36, %c0_23] : memref<108x256xf32, #tpu.memory_space<vmem>>, vector<12x256xf32>
    tpu.vector_store %arg6[%c36, %c0_23], %47 {strides = array<i32>} : memref<108x256xf32, #tpu.memory_space<vmem>>, vector<12x256xf32>,
    %c0_24 = arith.constant 0 : index
    %c17_25 = arith.constant 17 : index
    %49 = vector.load %arg5[%c0_24, %c17_25] : memref<12x290xf32, #tpu.memory_space<vmem>>, vector<12x256xf32>
    %c48 = arith.constant 48 : index
    %c0_26 = arith.constant 0 : index
    %50 = vector.load %arg6[%c48, %c0_26] : memref<108x256xf32, #tpu.memory_space<vmem>>, vector<12x256xf32>
    tpu.vector_store %arg6[%c48, %c0_26], %49 {strides = array<i32>} : memref<108x256xf32, #tpu.memory_space<vmem>>, vector<12x256xf32>,
    %c0_27 = arith.constant 0 : index
    %c18 = arith.constant 18 : index
    %51 = vector.load %arg5[%c0_27, %c18] : memref<12x290xf32, #tpu.memory_space<vmem>>, vector<12x256xf32>
    %c15_i32_28 = arith.constant 15 : i32
    %52 = vector.broadcast %c15_i32_28 : i32 to vector<1x256xi32>
    %53 = arith.cmpi slt, %22, %52 : vector<1x256xi32>
    %cst_29 = arith.constant 0.000000e+00 : f32
    %54 = vector.shape_cast %53 : vector<1x256xi1> to vector<1x256xi1>
    %55 = vector.broadcast %54 : vector<1x256xi1> to vector<12x256xi1>
    %56 = vector.broadcast %cst_29 : f32 to vector<12x256xf32>
    %57 = arith.select %55, %51, %56 : vector<12x256xi1>, vector<12x256xf32>
    %c60 = arith.constant 60 : index
    %c0_30 = arith.constant 0 : index
    %58 = vector.load %arg6[%c60, %c0_30] : memref<108x256xf32, #tpu.memory_space<vmem>>, vector<12x256xf32>
    tpu.vector_store %arg6[%c60, %c0_30], %57 {strides = array<i32>} : memref<108x256xf32, #tpu.memory_space<vmem>>, vector<12x256xf32>,
    %c0_31 = arith.constant 0 : index
    %c32 = arith.constant 32 : index
    %59 = vector.load %arg5[%c0_31, %c32] : memref<12x290xf32, #tpu.memory_space<vmem>>, vector<12x256xf32>
    %c1_i32_32 = arith.constant 1 : i32
    %60 = vector.broadcast %c1_i32_32 : i32 to vector<1x256xi32>
    %61 = arith.cmpi sge, %22, %60 : vector<1x256xi32>
    %cst_33 = arith.constant 0.000000e+00 : f32
    %62 = vector.shape_cast %61 : vector<1x256xi1> to vector<1x256xi1>
    %63 = vector.broadcast %62 : vector<1x256xi1> to vector<12x256xi1>
    %64 = vector.broadcast %cst_33 : f32 to vector<12x256xf32>
    %65 = arith.select %63, %59, %64 : vector<12x256xi1>, vector<12x256xf32>
    %c72 = arith.constant 72 : index
    %c0_34 = arith.constant 0 : index
    %66 = vector.load %arg6[%c72, %c0_34] : memref<108x256xf32, #tpu.memory_space<vmem>>, vector<12x256xf32>
    tpu.vector_store %arg6[%c72, %c0_34], %65 {strides = array<i32>} : memref<108x256xf32, #tpu.memory_space<vmem>>, vector<12x256xf32>,
    %c0_35 = arith.constant 0 : index
    %c33 = arith.constant 33 : index
    %67 = vector.load %arg5[%c0_35, %c33] : memref<12x290xf32, #tpu.memory_space<vmem>>, vector<12x256xf32>
    %c84 = arith.constant 84 : index
    %c0_36 = arith.constant 0 : index
    %68 = vector.load %arg6[%c84, %c0_36] : memref<108x256xf32, #tpu.memory_space<vmem>>, vector<12x256xf32>
    tpu.vector_store %arg6[%c84, %c0_36], %67 {strides = array<i32>} : memref<108x256xf32, #tpu.memory_space<vmem>>, vector<12x256xf32>,
    %c0_37 = arith.constant 0 : index
    %c34 = arith.constant 34 : index
    %69 = vector.load %arg5[%c0_37, %c34] : memref<12x290xf32, #tpu.memory_space<vmem>>, vector<12x256xf32>
    %c15_i32_38 = arith.constant 15 : i32
    %70 = vector.broadcast %c15_i32_38 : i32 to vector<1x256xi32>
    %71 = arith.cmpi slt, %22, %70 : vector<1x256xi32>
    %cst_39 = arith.constant 0.000000e+00 : f32
    %72 = vector.shape_cast %71 : vector<1x256xi1> to vector<1x256xi1>
    %73 = vector.broadcast %72 : vector<1x256xi1> to vector<12x256xi1>
    %74 = vector.broadcast %cst_39 : f32 to vector<12x256xf32>
    %75 = arith.select %73, %69, %74 : vector<12x256xi1>, vector<12x256xf32>
    %c96 = arith.constant 96 : index
    %c0_40 = arith.constant 0 : index
    %76 = vector.load %arg6[%c96, %c0_40] : memref<108x256xf32, #tpu.memory_space<vmem>>, vector<12x256xf32>
    tpu.vector_store %arg6[%c96, %c0_40], %75 {strides = array<i32>} : memref<108x256xf32, #tpu.memory_space<vmem>>, vector<12x256xf32>,
    %c0_41 = arith.constant 0 : index
    %c0_42 = arith.constant 0 : index
    %77 = vector.load %arg2[%c0_41, %c0_42] : memref<4x108xf32, #tpu.memory_space<vmem>>, vector<4x108xf32>
    %c0_43 = arith.constant 0 : index
    %c0_44 = arith.constant 0 : index
    %78 = vector.load %arg6[%c0_43, %c0_44] : memref<108x256xf32, #tpu.memory_space<vmem>>, vector<108x256xf32>
    %cst_45 = arith.constant dense<0.000000e+00> : vector<4x256xf32>
    %79 = tpu.matmul %77, %78, %cst_45 {dimension_numbers = #tpu.dot_dimension_numbers<[1], [0], [0], [1], [0, 0, 1, 1], [], []>} : vector<4x108xf32>, vector<108x256xf32>, vector<4x256xf32> -> vector<4x256xf32>
    %c0_46 = arith.constant 0 : index
    %c0_47 = arith.constant 0 : index
    %80 = vector.load %arg3[%c0_46, %c0_47] : memref<4x1xf32, #tpu.memory_space<vmem>>, vector<4x1xf32>
    %81 = vector.broadcast %80 : vector<4x1xf32> to vector<4x256xf32>
    %82 = arith.addf %79, %81 : vector<4x256xf32>
    %83 = vector.shape_cast %82 : vector<4x256xf32> to vector<1x4x256xf32>
    %c0_48 = arith.constant 0 : index
    %c0_49 = arith.constant 0 : index
    %c0_50 = arith.constant 0 : index
    %84 = vector.load %arg4[%c0_48, %c0_49, %c0_50] : memref<1x4x256xf32, #tpu.memory_space<vmem>>, vector<1x4x256xf32>
    tpu.vector_store %arg4[%c0_48, %c0_49, %c0_50], %83 {strides = array<i32>} : memref<1x4x256xf32, #tpu.memory_space<vmem>>, vector<1x4x256xf32>,
    return
  }
  func.func @transform_0(%arg0: i32) -> (i32, i32, i32) {
    %c0_i32 = arith.constant 0 : i32
    %c0_i32_0 = arith.constant 0 : i32
    %c0_i32_1 = arith.constant 0 : i32
    return %arg0, %c0_i32, %c0_i32_0 : i32, i32, i32
  }
  func.func @transform_1(%arg0: i32) -> (i32, i32) {
    %c0_i32 = arith.constant 0 : i32
    %c0_i32_0 = arith.constant 0 : i32
    %c0_i32_1 = arith.constant 0 : i32
    return %c0_i32, %c0_i32_0 : i32, i32
  }
  func.func @transform_2(%arg0: i32) -> (i32, i32) {
    %c0_i32 = arith.constant 0 : i32
    %c0_i32_0 = arith.constant 0 : i32
    %c0_i32_1 = arith.constant 0 : i32
    return %c0_i32, %c0_i32_0 : i32, i32
  }
  func.func @transform_3(%arg0: i32) -> (i32, i32, i32) {
    %c0_i32 = arith.constant 0 : i32
    %c0_i32_0 = arith.constant 0 : i32
    %c0_i32_1 = arith.constant 0 : i32
    return %arg0, %c0_i32, %c0_i32_0 : i32, i32, i32
  }
}

</mosaic_0001>

<bundles_post_ra>
// kernel: tpu_custom_call.1
= control target key start
LH: loop header
LB: loop body
LE: loop exit
PB: predicated region body
PF: predicated region fallthrough
CT: control target
= control target key end

     0   :  { %8 = vsyncpa [#allocation5], 0  ;;  %s1354_s0 = inlined_call_operand.vmem [shape: f32[2,12,256], index: 0, kind: input, shape index: {}]   ;;  %s1355_s1 = inlined_call_operand.vmem [shape: f32[4,108], index: 1, kind: input, shape index: {}]   ;;  %s1356_s2 = inlined_call_operand.vmem [shape: f32[4,1], index: 2, kind: input, shape index: {}]   ;;  %s1357_s3 = inlined_call_operand.hbm [shape: f32[2,4,256], index: 3, kind: output, shape index: {}]  }
   0x1   :  { %10 = vsyncpa [#allocation5 + $0x1], 0  ;;  %s1032_s12 = smov 0   ;;  %s1034_s13 = smov 0  }
   0x2   :  { %s1036_s14 = smov 0   ;;  %s1038_s15 = smov 0  }
   0x3 LB: > { %s1053_s16 = sadd.s32 4294967295, %s997_s15   ;;  %s818_s17 = sadd.s32 4294967294, %s997_s15   ;;  %s997_s15 = sphi %s1038_s15, %s1371_s15   ;;  %s993_s14 = sphi %s1036_s14, %s1370_s14   ;;  %s989_s13 = sphi %s1034_s13, %s1369_s13   ;;  %s985_s12 = sphi %s1032_s12, %s1368_s12  }
   0x4   : > { %s1057_s18 = sadd.s32 1, %s997_s15   ;;  %s91_s19 = sadd.s32 1, %s993_s14 }
   0x5   : > { %s88_s20 = ssub.s32 %s997_s15, %s1057_s18  ;;  %p101_p0 = scmp.ne.s32.totalorder %s993_s14, %s989_s13 }
   0x6   : > { %p89_p1 = scmp.eq.s32.totalorder %s88_s20, 0  ;;  %p102_p2 = scmp.eq.s32.totalorder %s1053_s16, 1 }
   0x7   : > { %p107_p3 = scmp.ne.s32.totalorder %s989_s13, %s985_s12  ;;  %p108_p4 = scmp.eq.s32.totalorder %s818_s17, 1 }
   0x8   : > { %s1068_s21 = scalar_select %p89_p1, %s993_s14, %s91_s19  }
   0x9   : > { %p1070_p5 = por %p102_p2, %p101_p0  ;;  %p1074_p6 = por %p108_p4, %p107_p3 }
   0xa   : > { %p821_p7 = scmp.ge.s32.totalorder %s997_s15, 1  ;;  %p140_p8 = scmp.lt.s32.totalorder %s997_s15, 3 }
   0xc   : > { %p141_p9 = pnand %p821_p7, %p140_p8 }
   0xd   : > { %p164_p10 = scmp.lt.s32.totalorder (!%p141_p9), %s1053_s16, 1  ;;  %vm171_vm0 = vcmask (!%p141_p9), 134144   ;;  %vm169_vm1 = vcmask (!%p141_p9), 138240   ;;  %v999_v0 = vmov (!%p141_p9), 0.0   ;;  %vm175_vm2 = vcmask (!%p141_p9), 273544   ;;  %s1000_s29 = smov (!%p141_p9), 17  }
   0xe   : > { %144 = sbr.rel (%p141_p9) target bundleno = 603 (0x25b), region = 32  ;;  %172 = vst.msk [vmem:[#allocation2 + $0x18] sm:$0xf] (!%p141_p9), %vm171_vm0, %v999_v0  ;;  %vm173_vm3 = vcmask (!%p141_p9), 277640   ;;  %732 = vmatprep.mubr.f32.mxu0 (!%p141_p9), %v999_v0  ;;  %v209_v5 = vlaneseq (!%p141_p9)  ;;  %vm205_vm4 = vcmask (!%p141_p9), 1043592   ;;  %vm201_vm5 = vcmask (!%p141_p9), 1047688  }
   0xf   : > { %170 = vst.msk [vmem:[#allocation2] sm:$0xff] (!%p141_p9), %vm169_vm1, %v999_v0  ;;  %s1001_s30 = smov (!%p141_p9), 126   ;;  %s1002_s4 = smov (!%p141_p9), 112   ;;  %vm266_vm8 = vcmask (!%p141_p9), 1043456   ;;  %v1009_v63 = vmov (!%p141_p9), 0   ;;  %vm331_vm9 = vcmask (!%p141_p9), 1031168  }
  0x10   : > { %176 = vst.msk [vmem:[#allocation2 + $0x28] sm:$0xf] (!%p141_p9), %vm175_vm2, %v999_v0  ;;  %v1087_v6 = vand.u32 (!%p141_p9), 127, %v209_v5  ;;  %s1003_s5 = smov (!%p141_p9), 110   ;;  %s1004_s6 = smov (!%p141_p9), 111   ;;  %916 = vset.pattern.permute.xlu0 (!%p141_p9), %v1009_v63  ;;  %vm372_vm12 = vcmask (!%p141_p9), 916480  }
  0x11   : > { %174 = vst.msk [vmem:[#allocation2 + $0x10] sm:$0xff] (!%p141_p9), %vm173_vm3, %v999_v0  ;;  %s1005_s7 = smov (!%p141_p9), 96   ;;  %s1006_s8 = smov (!%p141_p9), 127   ;;  %v652_v0 = vld [vmem:[%s1356_s2] sm:$0xf] (!%p141_p9)  ;;  %vm427_vm13 = vcmask (!%p141_p9), 908288  }
  0x12   : > { %v1090_v7 = vadd.s32 (!%p141_p9), 128, %v1087_v6  ;;  %v216_v11 = vand.u32 (!%p141_p9), 15, %v1087_v6  ;;  %s1007_s9 = smov (!%p141_p9), 95   ;;  %s1008_s10 = smov (!%p141_p9), 94   ;;  %vm464_vm14 = vcmask (!%p141_p9), 900096   ;;  %vm519_vm15 = vcmask (!%p141_p9), 785408  }
  0x13   : > { %vm1010_vm2 = vmmov (!%p141_p9), 1   ;;  %s834_s26 = sshll.u32 (!%p141_p9), %s1053_s16, 7 }
  0x14   : > { %v223_v8 = vand.u32 (!%p141_p9), 15, %v1090_v7  ;;  %vm1108_vm7 = vcmp.ge.s32.totalorder (!%p141_p9), %v216_v11, 1  ;;  %vm1176_vm10 = vcmp.lt.s32.totalorder (!%p141_p9), %v216_v11, 15 }
  0x15   : > { %s165_s24 = scalar_select %p164_p10, %s1053_s16, 1 }
  0x16   : > { %vm1096_vm6 = vcmp.ge.s32.totalorder %v223_v8, 1  ;;  %vm1182_vm11 = vcmp.lt.s32.totalorder %v223_v8, 15  ;;  %s1011_s16 = smov [#allocation4]  }
  0x17   : > { %s833_s25 = sshll.u32 %s165_s24, 5  ;;  %vm917_vm3 = vmpackc.low %vm1010_vm2, %vm1096_vm6  ;;  %s161_s24 = sand.u32 1, %s989_s13  }
  0x18   : > { %s168_s28 = scalar_lea.vmem %s1354_s0, %s833_s25  ;;  %s822_s25 = sshll.u32 %s161_s24, 3 }
  0x19   : > { %v179_v1 = vld [vmem:[%s168_s28 + $0x10] sm:$0xf]  ;;  %v177_v2 = vld [vmem:[%s168_s28] sm:$0xff]  ;;  %v180_v3 = vld [vmem:[%s168_s28 + $0x18] sm:$0xf]  ;;  %s163_s27 = scalar_lea.vmem [#allocation4], %s822_s25 }
  0x1a   : > { %189 = vrot.lane.b32.xlu1 %v179_v1, %s1000_s29  ;;  %185 = vrot.lane.b32.xlu0 %v177_v2, %s1000_s29  ;;  %v178_v4 = vld [vmem:[%s168_s28 + $0x8] sm:$0xff]  ;;  %s759_s28 = sshll.u32 %s163_s27, 4  ;;  %s1314_s28 = int_to_ptr.vmem [resolvable:$true] %s759_s28 }
  0x1e   : > { %191 = vrot.lane.b32.xlu1 %v180_v3, %s1000_s29  ;;  %187 = vrot.lane.b32.xlu0 %v178_v4, %s1000_s29 }
  0x8c   : > { %v190_v9 = vpop.permute.xlu1 %189  ;;  %v186_v10 = vpop.permute.xlu0 %185 }
  0x8d   : > { %206 = vst.msk [vmem:[#allocation2 + $0x18] sm:$0xf] %vm205_vm4, %v190_v9  ;;  %vm920_vm4 = vmpackc.low %vm1010_vm2, %vm1108_vm7 }
  0x8e   : > { %202 = vst.msk [vmem:[#allocation2] sm:$0xff] %vm201_vm5, %v186_v10  ;;  %vm923_vm5 = vmpackc.low %vm1182_vm11, %vm1010_vm2 }
  0x90   : > { %v192_v13 = vpop.permute.xlu1 %191  ;;  %v188_v14 = vpop.permute.xlu0 %187 }
  0x91   : > { %v194_v15 = vsel %vm169_vm1, %v190_v9, %v192_v13  ;;  %208 = vst.msk [vmem:[#allocation2 + $0x28] sm:$0xf] %vm171_vm0, %v192_v13  ;;  %v1103_v16 = vsel %vm169_vm1, %v186_v10, %v188_v14  ;;  %vm288_vm0 = vcmask 1039360  }
  0x92   : > { %204 = vst.msk [vmem:[#allocation2 + $0x10] sm:$0xff] %vm169_vm1, %v188_v14  ;;  %207 = vst [vmem:[#allocation2 + $0x20] sm:$0xf] %v194_v15  ;;  %v268_v42 = vrot.slane %v1103_v16, 4  ;;  %vm569_vm1 = vcmask 777216  }
  0x94   : > { %v238_v19 = vld [vmem:[#allocation2 + $0x18] sm:$0xf] }
  0x95   : > { %v1112_v18 = vld [vmem:[#allocation2] sm:$0xff]  ;;  %v248_v21 = vsel %vm1108_vm7, %v238_v19, 0.0  ;;  %v351_v23 = vld [vmem:[#allocation2 + $0x18] sm:$0xf] }
  0x96   : > { %319 = vrot.lane.b32.xlu1 %v1112_v18, %s1001_s30  ;;  %252 = vst [vmem:[#allocation3 + $0x10] sm:$0xf] %v248_v21  ;;  %v304_v27 = vld [vmem:[#allocation2 + $0x18] sm:$0xf]  ;;  %v267_v38 = vrot.slane %v1112_v18, 4 }
  0x97   : > { %v443_v29 = vld [vmem:[#allocation2 + $0x18] sm:$0xf] }
  0x98   : > { %v353_v22 = vld [vmem:[#allocation2 + $0x28] sm:$0xf]  ;;  %v406_v31 = vld [vmem:[#allocation2 + $0x18] sm:$0xf] }
  0x99   : > { %v1116_v20 = vld [vmem:[#allocation2 + $0x10] sm:$0xff]  ;;  %v239_v24 = vld [vmem:[#allocation2 + $0x20] sm:$0xf]  ;;  %v306_v25 = vld [vmem:[#allocation2 + $0x28] sm:$0xf] }
  0x9a   : > { %364 = vrot.lane.b32.xlu1 %v1116_v20, %s1002_s4  ;;  %323 = vrot.lane.b32.xlu0 %v1116_v20, %s1001_s30  ;;  %v249_v26 = vsel %vm1096_vm6, %v239_v24, 0.0  ;;  %v408_v28 = vld [vmem:[#allocation2 + $0x28] sm:$0xf]  ;;  %v498_v32 = vld [vmem:[#allocation2 + $0x18] sm:$0xf]  ;;  %v269_v41 = vrot.slane %v1116_v20, 4 }
  0x9b   : > { %253 = vst [vmem:[#allocation3 + $0x18] sm:$0xf] %v249_v26  ;;  %v445_v30 = vld [vmem:[#allocation2 + $0x28] sm:$0xf]  ;;  %v305_v34 = vld [vmem:[#allocation2 + $0x20] sm:$0xf] }
  0x9c   : > { %v500_v33 = vld [vmem:[#allocation2 + $0x28] sm:$0xf]  ;;  %v352_v35 = vld [vmem:[#allocation2 + $0x20] sm:$0xf]  ;;  %v257_v44 = vld [vmem:[#allocation2 + $0x18] sm:$0xf] }
  0x9d   : > { %v407_v36 = vld [vmem:[#allocation2 + $0x20] sm:$0xf]  ;;  %v259_v40 = vld [vmem:[#allocation2 + $0x28] sm:$0xf]  ;;  %v270_v47 = vrot.slane %v257_v44, 4 }
  0x9e   : > { %370 = vrot.lane.b32.xlu1 %v353_v22, %s1002_s4  ;;  %366 = vrot.lane.b32.xlu0 %v351_v23, %s1002_s4  ;;  %v444_v37 = vld [vmem:[#allocation2 + $0x20] sm:$0xf]  ;;  %v274_v43 = vrot.slane %v259_v40, 4  ;;  %v541_v49 = vld [vmem:[#allocation2 + $0x28] sm:$0xf] }
  0x9f   : > { %v499_v39 = vld [vmem:[#allocation2 + $0x20] sm:$0xf]  ;;  %v271_v50 = vsel %vm266_vm8, %v267_v38, %v270_v47  ;;  %v555_v52 = vrot.slane %v541_v49, 4  ;;  %v539_v53 = vld [vmem:[#allocation2 + $0x18] sm:$0xf] }
  0xa0   : > { %v258_v45 = vld [vmem:[#allocation2 + $0x20] sm:$0xf]  ;;  %v275_v46 = vsel %vm266_vm8, %v269_v41, %v274_v43  ;;  %v551_v55 = vrot.slane %v539_v53, 4  ;;  %v587_v59 = vld [vmem:[#allocation2 + $0x28] sm:$0xf] }
  0xa1   : > { %v272_v48 = vrot.slane %v258_v45, 4  ;;  %v556_v54 = vsel %vm266_vm8, %v269_v41, %v555_v52  ;;  %v540_v57 = vld [vmem:[#allocation2 + $0x20] sm:$0xf]  ;;  %v585_v62 = vld [vmem:[#allocation2 + $0x18] sm:$0xf] }
  0xa2   : > { %360 = vrot.lane.b32.xlu1 %v1112_v18, %s1002_s4  ;;  %329 = vrot.lane.b32.xlu0 %v306_v25, %s1001_s30  ;;  %v552_v56 = vsel %vm266_vm8, %v267_v38, %v551_v55  ;;  %v586_v58 = vld [vmem:[#allocation2 + $0x20] sm:$0xf]  ;;  %v553_v60 = vrot.slane %v540_v57, 4 }
  0xa3   : > { %v273_v51 = vsel %vm266_vm8, %v268_v42, %v272_v48 }
  0xa4   : > { %v554_v61 = vsel %vm266_vm8, %v268_v42, %v553_v60 }
  0xa6   : > { %325 = vrot.lane.b32.xlu1 %v304_v27, %s1001_s30  ;;  %452 = vrot.lane.b32.xlu0 %v1112_v18, %s1003_s5 }
  0xaa   : > { %456 = vrot.lane.b32.xlu1 %v1116_v20, %s1003_s5  ;;  %419 = vrot.lane.b32.xlu0 %v1116_v20, %s1004_s6 }
  0xae   : > { %415 = vrot.lane.b32.xlu1 %v1112_v18, %s1004_s6  ;;  %425 = vrot.lane.b32.xlu0 %v408_v28, %s1004_s6 }
  0xb2   : > { %458 = vrot.lane.b32.xlu1 %v443_v29, %s1003_s5  ;;  %462 = vrot.lane.b32.xlu0 %v445_v30, %s1003_s5 }
  0xb6   : > { %511 = vrot.lane.b32.xlu1 %v1116_v20, %s1005_s7  ;;  %421 = vrot.lane.b32.xlu0 %v406_v31, %s1004_s6 }
  0xba   : > { %513 = vrot.lane.b32.xlu1 %v498_v32, %s1005_s7  ;;  %507 = vrot.lane.b32.xlu0 %v1112_v18, %s1005_s7 }
  0xbe   : > { %517 = vrot.lane.b32.xlu0 %v500_v33, %s1005_s7  ;;  %321 = vrot.lane.b32.xlu1 %v1103_v16, %s1001_s30 }
  0xc2   : > { %362 = vrot.lane.b32.xlu0 %v1103_v16, %s1002_s4  ;;  %327 = vrot.lane.b32.xlu1 %v305_v34, %s1001_s30 }
  0xc6   : > { %368 = vrot.lane.b32.xlu0 %v352_v35, %s1002_s4  ;;  %417 = vrot.lane.b32.xlu1 %v1103_v16, %s1004_s6  ;;  %s1312_s4 = scalar_lea.hbm %s1357_s3, %s834_s26 }
  0xca   : > { %454 = vrot.lane.b32.xlu0 %v1103_v16, %s1003_s5  ;;  %423 = vrot.lane.b32.xlu1 %v407_v36, %s1004_s6  ;;  %s935_s6 = scalar_lea.vmem %s1314_s28, 128 }
  0xcb   : > { %p936_p11 = scmp.ne.s32.totalorder %s1314_s28, %s935_s6 }
  0xcd   : > { %p937_p12 = pnand %p936_p11, %p1070_p5 }
  0xce   : > { %509 = vrot.lane.b32.xlu0 %v1103_v16, %s1005_s7  ;;  %460 = vrot.lane.b32.xlu1 %v444_v37, %s1003_s5  ;;  %s745_s5 = scalar_lea.sflag [#allocation5], %s161_s24 }
  0xcf   : > { %p938_p13 = pneg %p937_p12 }
  0xd2   : > { %276 = vrot.lane.b32.xlu0 %v267_v38, %s1006_s8  ;;  %515 = vrot.lane.b32.xlu1 %v499_v39, %s1005_s7  ;;  %s939_s7 = sshll.u32 %s1011_s16, 4  ;;  %s940_s7 = int_to_ptr.vmem [resolvable:$false] %s939_s7 }
  0xd3   : > { %p942_p0 = scmp.lt.s32.totalorder %s1314_s28, %s940_s7 }
  0xd6   : > { %280 = vrot.lane.b32.xlu1 %v269_v41, %s1006_s8  ;;  %278 = vrot.lane.b32.xlu0 %v268_v42, %s1006_s8 }
  0xda   : > { %561 = vrot.lane.b32.xlu1 %v269_v41, %s1007_s9  ;;  %286 = vrot.lane.b32.xlu0 %v275_v46, %s1006_s8 }
  0xde   : > { %282 = vrot.lane.b32.xlu0 %v271_v50, %s1006_s8  ;;  %284 = vrot.lane.b32.xlu1 %v273_v51, %s1006_s8  ;;  %s941_s8 = scalar_lea.vmem %s940_s7, 256 }
  0xdf   : > { %p943_p1 = scmp.lt.s32.totalorder %s941_s8, %s935_s6 }
  0xe1   : > { %p944_p2 = por %p943_p1, %p942_p0 }
  0xe2   : > { %559 = vrot.lane.b32.xlu0 %v268_v42, %s1007_s9  ;;  %567 = vrot.lane.b32.xlu1 %v556_v54, %s1007_s9 }
  0xe3   : > { %p945_p3 = pnand %p944_p2, %p938_p13 }
  0xe6   : > { %557 = vrot.lane.b32.xlu0 %v267_v38, %s1007_s9  ;;  %563 = vrot.lane.b32.xlu1 %v552_v56, %s1007_s9 }
  0xea   : > { %596 = vrot.lane.b32.xlu0 %v1103_v16, %s1008_s10  ;;  %598 = vrot.lane.b32.xlu1 %v1116_v20, %s1008_s10 }
  0xee   : > { %602 = vrot.lane.b32.xlu0 %v586_v58, %s1008_s10  ;;  %604 = vrot.lane.b32.xlu1 %v587_v59, %s1008_s10 }
  0xf2   : > { %565 = vrot.lane.b32.xlu0 %v554_v61, %s1007_s9  ;;  %600 = vrot.lane.b32.xlu1 %v585_v62, %s1008_s10 }
  0xf6   : > { %594 = vrot.lane.b32.xlu0 %v1112_v18, %s1008_s10 }
  0xfa   : > { %655 = vperm.xlu0 %916, %v652_v0  }
 0x108   : > { %v320_v1 = vpop.permute.xlu1 %319 }
 0x10c   : > { %v365_v2 = vpop.permute.xlu1 %364  ;;  %v324_v3 = vpop.permute.xlu0 %323 }
 0x110   : > { %v371_v4 = vpop.permute.xlu1 %370  ;;  %v367_v5 = vpop.permute.xlu0 %366 }
 0x114   : > { %v361_v9 = vpop.permute.xlu1 %360  ;;  %v330_v10 = vpop.permute.xlu0 %329 }
 0x118   : > { %v326_v13 = vpop.permute.xlu1 %325  ;;  %v453_v14 = vpop.permute.xlu0 %452 }
 0x11c   : > { %v457_v15 = vpop.permute.xlu1 %456  ;;  %v420_v19 = vpop.permute.xlu0 %419 }
 0x120   : > { %v416_v20 = vpop.permute.xlu1 %415  ;;  %v426_v21 = vpop.permute.xlu0 %425 }
 0x124   : > { %v1168_v22 = vpop.permute.xlu1 %458  ;;  %v1170_v23 = vpop.permute.xlu0 %462 }
 0x128   : > { %v512_v24 = vpop.permute.xlu1 %511  ;;  %v422_v25 = vpop.permute.xlu0 %421 }
 0x12c   : > { %v1172_v26 = vpop.permute.xlu1 %513  ;;  %v508_v27 = vpop.permute.xlu0 %507 }
 0x130   : > { %v1186_v30 = vpop.permute.xlu0 %517  ;;  %v322_v31 = vpop.permute.xlu1 %321 }
 0x131   : > { %v1188_v32 = vsel %vm331_vm9, %v320_v1, %v322_v31  ;;  %v1190_v33 = vsel %vm331_vm9, %v322_v31, %v324_v3 }
 0x134   : > { %v363_v34 = vpop.permute.xlu0 %362  ;;  %v328_v6 = vpop.permute.xlu1 %327 }
 0x135   : > { %v373_v11 = vsel %vm372_vm12, %v361_v9, %v363_v34  ;;  %v374_v35 = vsel %vm372_vm12, %v363_v34, %v365_v2  ;;  %v334_v7 = vsel %vm331_vm9, %v326_v13, %v328_v6  ;;  %v335_v8 = vsel %vm331_vm9, %v328_v6, %v330_v10  ;;  %vm926_vm9 = vmpackc.low %vm1176_vm10, %vm1010_vm2 }
 0x136   : > { %v381_v36 = vsel %vm1108_vm7, %v373_v11, 0.0  ;;  %v382_v37 = vsel %vm1096_vm6, %v374_v35, 0.0  ;;  %v342_v38 = vsel %vm1176_vm10, %v334_v7, 0.0  ;;  %v343_v39 = vsel %vm1182_vm11, %v335_v8, 0.0 }
 0x137   : > { %v389_v40 = vrot.slane %v381_v36, 4  ;;  %v390_v41 = vrot.slane %v382_v37, 4  ;;  %346 = vst [vmem:[#allocation3 + $0x40] sm:$0xf] %v342_v38  ;;  %347 = vst [vmem:[#allocation3 + $0x48] sm:$0xf] %v343_v39 }
 0x138   : > { %v369_v42 = vpop.permute.xlu0 %368  ;;  %v418_v43 = vpop.permute.xlu1 %417 }
 0x139   : > { %399 = vst [vmem:[#allocation3 + $0x40] sm:$0xf0] %v389_v40  ;;  %400 = vst [vmem:[#allocation3 + $0x48] sm:$0xf0] %v390_v41  ;;  %v375_v44 = vsel %vm372_vm12, %v367_v5, %v369_v42  ;;  %v376_v45 = vsel %vm372_vm12, %v369_v42, %v371_v4  ;;  %v1205_v46 = vsel %vm427_vm13, %v416_v20, %v418_v43  ;;  %vm606_vm12 = vcmask 769024  }
 0x13a   : > { %v1208_v47 = vsel %vm427_vm13, %v418_v43, %v420_v19  ;;  %v383_v48 = vsel %vm1108_vm7, %v375_v44, 0.0  ;;  %v384_v49 = vsel %vm1096_vm6, %v376_v45, 0.0 }
 0x13b   : > { %v391_v50 = vrot.slane %v383_v48, 4  ;;  %v393_v51 = vrot.slane %v384_v49, 4 }
 0x13c   : > { %v455_v52 = vpop.permute.xlu0 %454  ;;  %v424_v53 = vpop.permute.xlu1 %423 }
 0x13d   : > { %v1215_v54 = vsel %vm266_vm8, %v389_v40, %v391_v50  ;;  %v1218_v55 = vsel %vm266_vm8, %v390_v41, %v393_v51  ;;  %v465_v56 = vsel %vm464_vm14, %v453_v14, %v455_v52  ;;  %v466_v57 = vsel %vm464_vm14, %v455_v52, %v457_v15 }
 0x13e   : > { %v473_v58 = vsel %vm1176_vm10, %v465_v56, 0.0  ;;  %v474_v59 = vsel %vm1182_vm11, %v466_v57, 0.0  ;;  %v430_v60 = vsel %vm427_vm13, %v422_v25, %v424_v53  ;;  %v431_v61 = vsel %vm427_vm13, %v424_v53, %v426_v21  ;;  %vm929_vm13 = vmpackc.low %vm1096_vm6, %vm1010_vm2 }
 0x13f   : > { %v481_v62 = vrot.slane %v473_v58, 4  ;;  %v482_v63 = vrot.slane %v474_v59, 4  ;;  %438 = vst [vmem:[#allocation3 + $0x70] sm:$0xf] %v430_v60  ;;  %439 = vst [vmem:[#allocation3 + $0x78] sm:$0xf] %v431_v61 }
 0x140   : > { %v510_v0 = vpop.permute.xlu0 %509  ;;  %v461_v1 = vpop.permute.xlu1 %460  ;;  %v633_v43 = vld [vmem:[#allocation3 + $0x48] sm:$0xff]  ;;  %v632_v49 = vld [vmem:[#allocation3 + $0x40] sm:$0xff] }
 0x141   : > { %491 = vst [vmem:[#allocation3 + $0x70] sm:$0xf0] %v481_v62  ;;  %492 = vst [vmem:[#allocation3 + $0x78] sm:$0xf0] %v482_v63  ;;  %v1229_v2 = vsel %vm519_vm15, %v508_v27, %v510_v0  ;;  %v1232_v3 = vsel %vm519_vm15, %v510_v0, %v512_v24  ;;  %v467_v4 = vsel %vm464_vm14, %v1168_v22, %v461_v1 }
 0x142   : > { %v468_v5 = vsel %vm464_vm14, %v461_v1, %v1170_v23  ;;  %v475_v9 = vsel %vm1176_vm10, %v467_v4, 0.0  ;;  %v843_v48 = vpack.c.bf16 %v1218_v55, %v633_v43 }
 0x143   : > { %v476_v10 = vsel %vm1182_vm11, %v468_v5, 0.0  ;;  %v483_v13 = vrot.slane %v475_v9, 4 }
 0x144   : > { %v485_v14 = vrot.slane %v476_v10, 4  ;;  %v277_v15 = vpop.permute.xlu0 %276  ;;  %v516_v19 = vpop.permute.xlu1 %515 }
 0x145   : > { %v1243_v20 = vsel %vm266_vm8, %v481_v62, %v483_v13  ;;  %v522_v22 = vsel %vm519_vm15, %v1172_v26, %v516_v19  ;;  %v523_v23 = vsel %vm519_vm15, %v516_v19, %v1186_v30 }
 0x146   : > { %v1246_v21 = vsel %vm266_vm8, %v482_v63, %v485_v14  ;;  %v530_v24 = vsel %vm1108_vm7, %v522_v22, 0.0  ;;  %v531_v25 = vsel %vm1096_vm6, %v523_v23, 0.0  ;;  %v933_v12 = vpack.c.bf16 %v1229_v2, %v1243_v20  ;;  %vm860_vm6 = vmpackc.low %vm266_vm8, %vm1010_vm2  ;;  %v623_v20 = vld [vmem:[%s1355_s1] sm:$0xf] }
 0x147   : > { %534 = vst [vmem:[#allocation3 + $0xa0] sm:$0xf] %v530_v24  ;;  %535 = vst [vmem:[#allocation3 + $0xa8] sm:$0xf] %v531_v25 }
 0x148   : > { %v281_v27 = vpop.permute.xlu1 %280  ;;  %v279_v31 = vpop.permute.xlu0 %278  ;;  %v639_v51 = vld [vmem:[#allocation3 + $0x78] sm:$0xff]  ;;  %v638_v56 = vld [vmem:[#allocation3 + $0x70] sm:$0xff] }
 0x149   : > { %v289_v34 = vsel %vm288_vm0, %v277_v15, %v279_v31  ;;  %v290_v6 = vsel %vm288_vm0, %v279_v31, %v281_v27  ;;  %v847_v55 = vpack.c.bf16 %v639_v51, %v1208_v47  ;;  %v930_v47 = vpack.c.bf16 %v1232_v3, %v1246_v21 }
 0x14a   : > { %297 = vst [vmem:[#allocation3 + $0x10] sm:$0xf0] %v289_v34  ;;  %298 = vst [vmem:[#allocation3 + $0x18] sm:$0xf0] %v290_v6 }
 0x14c   : > { %v562_v11 = vpop.permute.xlu1 %561  ;;  %v287_v26 = vpop.permute.xlu0 %286 }
 0x150   : > { %v283_v35 = vpop.permute.xlu0 %282  ;;  %v285_v7 = vpop.permute.xlu1 %284 }
 0x151   : > { %v291_v30 = vsel %vm288_vm0, %v283_v35, %v285_v7  ;;  %v292_v8 = vsel %vm288_vm0, %v285_v7, %v287_v26  ;;  %v627_v36 = vld [vmem:[#allocation3 + $0x18] sm:$0xff]  ;;  %v626_v37 = vld [vmem:[#allocation3 + $0x10] sm:$0xff] }
 0x152   : > { %v918_v40 = vpack.c.bf16 %v627_v36, %v1103_v16  ;;  %v921_v42 = vpack.c.bf16 %v626_v37, %v1112_v18  ;;  %v924_v44 = vpack.c.bf16 %v1190_v33, %v292_v8  ;;  %v927_v18 = vpack.c.bf16 %v1188_v32, %v291_v30 }
 0x153   : > { %v845_v33 = vpack.c.bf16 %v1215_v54, %v632_v49  ;;  %v849_v32 = vpack.c.bf16 %v638_v56, %v1205_v46 }
 0x154   : > { %v560_v38 = vpop.permute.xlu0 %559  ;;  %v568_v39 = vpop.permute.xlu1 %567  ;;  %919 = vmatprep.subr.msk.bf16.mxu0 %vm917_vm3, %v918_v40 }
 0x155   : > { %v571_v41 = vsel %vm569_vm1, %v560_v38, %v562_v11  ;;  %922 = vmatpush1.bf16.msk.msra.mxu0 %vm920_vm4, %v921_v42 }
 0x156   : > { %579 = vst [vmem:[#allocation3 + $0xa8] sm:$0xf0] %v571_v41  ;;  %925 = vmatprep.subr.msk.bf16.mxu0 %vm923_vm5, %v924_v44 }
 0x158   : > { %v558_v16 = vpop.permute.xlu0 %557  ;;  %v564_v45 = vpop.permute.xlu1 %563 }
 0x159   : > { %v570_v50 = vsel %vm569_vm1, %v558_v16, %v560_v38  ;;  %928 = vmatpush1.bf16.msk.msra.mxu0 %vm926_vm9, %v927_v18 }
 0x15a   : > { %578 = vst [vmem:[#allocation3 + $0xa0] sm:$0xf0] %v570_v50  ;;  %844 = vmatprep.subr.bf16.mxu0 %v843_v48 }
 0x15c   : > { %v597_v52 = vpop.permute.xlu0 %596  ;;  %v599_v53 = vpop.permute.xlu1 %598 }
 0x15d   : > { %v608_v57 = vsel %vm606_vm12, %v597_v52, %v599_v53  ;;  %846 = vmatpush1.bf16.msra.mxu0 %v845_v33  ;;  %v645_v29 = vld [vmem:[#allocation3 + $0xa8] sm:$0xff] }
 0x15e   : > { %v616_v58 = vsel %vm1182_vm11, %v608_v57, 0.0  ;;  %848 = vmatprep.subr.bf16.mxu0 %v847_v55 }
 0x160   : > { %v603_v59 = vpop.permute.xlu0 %602  ;;  %v605_v60 = vpop.permute.xlu1 %604 }
 0x161   : > { %v610_v61 = vsel %vm606_vm12, %v603_v59, %v605_v60  ;;  %850 = vmatpush1.bf16.msra.mxu0 %v849_v32  ;;  %v644_v3 = vld [vmem:[#allocation3 + $0xa0] sm:$0xff] }
 0x162   : > { %v618_v54 = vsel %vm1182_vm11, %v610_v61, 0.0  ;;  %931 = vmatprep.subr.msk.bf16.mxu0 %vm929_vm13, %v930_v47  ;;  %vm932_vm11 = vmpackc.low %vm1108_vm7, %vm1010_vm2  ;;  %vm658_vm7 = vcmask 883712  }
 0x163   : > { %622 = vst [vmem:[#allocation3 + $0xd8] sm:$0xf] %v618_v54 }
 0x164   : > { %v566_v62 = vpop.permute.xlu0 %565  ;;  %v601_v63 = vpop.permute.xlu1 %600 }
 0x165   : > { %v572_v46 = vsel %vm569_vm1, %v564_v45, %v566_v62  ;;  %v573_v0 = vsel %vm569_vm1, %v566_v62, %v568_v39  ;;  %v609_v1 = vsel %vm606_vm12, %v601_v63, %v603_v59  ;;  %934 = vmatpush1.bf16.msk.msra.mxu0 %vm932_vm11, %v933_v12 }
 0x166   : > { %v617_v4 = vsel %vm1176_vm10, %v609_v1, 0.0  ;;  %v855_v5 = vpack.c.bf16 %v573_v0, %v645_v29  ;;  %v857_v9 = vpack.c.bf16 %v572_v46, %v644_v3 }
 0x167   : > { %621 = vst [vmem:[#allocation3 + $0xd0] sm:$0xf] %v617_v4 }
 0x168   : > { %v595_v10 = vpop.permute.xlu0 %594  ;;  %856 = vmatprep.subr.bf16.mxu0 %v855_v5 }
 0x169   : > { %v607_v13 = vsel %vm606_vm12, %v595_v10, %v597_v52  ;;  %858 = vmatpush1.bf16.msra.mxu0 %v857_v9 }
 0x16a   : > { %v615_v17 = vsel %vm1176_vm10, %v607_v13, 0.0  ;;  %v651_v14 = vld [vmem:[#allocation3 + $0xd8] sm:$0xf] }
 0x16b   : > { %v859_v2 = vpack.c.bf16 %v651_v14, %v616_v58 }
 0x16d   : > { %861 = vmatprep.subr.msk.bf16.mxu0 %vm860_vm6, %v859_v2 }
 0x16e   : > { %v650_v15 = vld [vmem:[#allocation3 + $0xd0] sm:$0xf] }
 0x16f   : > { %v862_v19 = vpack.c.bf16 %v650_v15, %v615_v17 }
 0x171   : > { %864 = vmatpush1.bf16.msk.msra.mxu0 %vm860_vm6, %v862_v19 }
 0x174   : > { %827 = vmatmul.mubr.msk.f32.vlgmr.msra.gmra.mrb[0].mxu0 %vm658_vm7, %v623_v20 }
 0x179   : > { %v656_v28 = vpop.permute.xlu0 %655 }
 0x247   : > { %v734_v21 = vpop.f32.mrb[0].mxu0 }
 0x248   : > { %v735_v22 = vadd.f32 %v734_v21, %v656_v28  ;;  %v736_v23 = vpop.f32.mrb[1].mxu0 }
 0x249   : > { %v737_v24 = vadd.f32 %v736_v23, %v656_v28 }
 0x24b   : > { %v741_v25 = vcombine.low %v735_v22, %v737_v24 }
 0x24d   : > { %743 = vst [vmem:[%s163_s27] sm:$0xff] %v741_v25 }
 0x24e   : > { %948 = shalt.err (!%p945_p3)
}
 0x24f   : > { %s949_s9 = scalar_lea.hbm %s1312_s4, 128  ;;  %s953_s17 = scalar_lea.hbm %s1357_s3, 256 }
 0x250   : > { %p950_p4 = scmp.ne.s32.totalorder %s1312_s4, %s949_s9  ;;  %p954_p9 = scmp.lt.u32.totalorder %s1312_s4, %s1357_s3 }
 0x251   : > { %p955_p10 = scmp.lt.u32.totalorder %s953_s17, %s949_s9  ;;  %p957_p12 = scmp.lt.u32.totalorder %s949_s9, %s1312_s4 }
 0x252   : > { %p951_p7 = pnand %p950_p4, %p1070_p5 }
 0x253   : > { %p956_p11 = por %p955_p10, %p954_p9 }
 0x254   : > { %p952_p8 = pneg %p951_p7 }
 0x255   : > { %p958_p13 = por %p957_p12, %p956_p11 }
 0x257   : > { %p959_p0 = pnand %p958_p13, %p952_p8 }
 0x259   : > { %962 = shalt.err (!%p959_p0)
}
 0x25a   : > { %865 = dma.vmem_to_hbm [thread:$0]  (%p1070_p5), %s1314_s28, 128, %s1312_s4, %s745_s5  }
 0x25b PF: > { %p871_p1 = scmp.ge.s32.totalorder %s997_s15, 2  ;;  %s771_s24 = sand.u32 1, %s985_s12  }
 0x25c   : > { %s772_s25 = scalar_lea.sflag [#allocation5], %s771_s24 }
 0x25d   : > { %p868_p2 = pnand %p871_p1, %p1074_p6 }
 0x25f   : > { %980 = dma.done.wait (!%p868_p2), %s772_s25, 128  }
 0x260   : > { %982 = vsyncadd (!%p868_p2), %s772_s25, 4294967168  ;;  %p13_p3 = scmp.ge.s32.totalorder %s1057_s18, 4   ;;  %s1368_s12 = smov %s989_s13 }
 0x261   : > { %s1369_s13 = smov %s993_s14  ;;  %s1370_s14 = smov %s1068_s21 }
 0x262   : > { %s1371_s15 = smov %s1057_s18  ;;  %15 = sbr.rel (!%p13_p3) target bundleno = 3 (0x3), region = 67 }
 0x269   :  { %777 = vsyncpa [#allocation5], 1 }
 0x26a   :  { %779 = vsyncpa [#allocation5 + $0x1], 1 }

</bundles_post_ra>
